<compile_context>
chip_gen: v5e
topology: v5e:2x2
jax: 0.10.0
libtpu: 0.0.40
codegen_flags: <defaults>
</compile_context>

<pallas_src>
import functools
import math

import jax
import jax.numpy as jnp
from jax.experimental import pallas as pl
from jax.experimental.pallas import tpu as pltpu


def make_positional_encoding(d_model: int, max_len: int = 5000,
                             dtype=jnp.float32) -> jnp.ndarray:
    """Deterministic buffer init, mirrors PositionalEncoding.__init__ (shape (max_len, d_model))."""
    position = jnp.arange(max_len, dtype=jnp.float32)[:, None]                       # (max_len, 1)
    div_term = jnp.exp(
        jnp.arange(0, d_model, 2, dtype=jnp.float32) * (-math.log(10000.0) / d_model)
    )                                                                                # (d_model//2,)
    angles = position * div_term                                                     # (max_len, d_model//2)
    pe = jnp.zeros((max_len, d_model), dtype=jnp.float32)
    pe = pe.at[:, 0::2].set(jnp.sin(angles))
    pe = pe.at[:, 1::2].set(jnp.cos(angles))
    return pe.astype(dtype)


def _pe_add_bcast_kernel(x_ref, pe_ref, o_ref, *, batch: int):
    # x_ref / o_ref: (TS, B*D) lane-dense tiles.  pe_ref: (TS, D).
    pe = pe_ref[...]
    if batch > 1:
        # Replicate pe along the lane axis to match the flattened layout
        # (column b*D + d  <->  pe[:, d]).  Pure VPU/XLU work — free filler
        # under the HBM-bandwidth bound.
        pe = jnp.concatenate([pe] * batch, axis=-1)
    o_ref[...] = x_ref[...] + pe


def _pe_add_folded_kernel(x_ref, pe_ref, o_ref):
    # x_ref / pe_ref / o_ref: identical (TS, F*B*D) lane-dense tiles
    # (pe already broadcast over batch and folded outside the kernel).
    o_ref[...] = x_ref[...] + pe_ref[...]


def _pick_tile_rows(total_rows: int, bytes_per_row: int, *, max_rows: int = 2048) -> int:
    # Per-grid-step VMEM budget with double buffering; fits v5e's 16 MiB default
    # scoped VMEM and leaves ample room on v6e/v7x.
    budget = 12 * 1024 * 1024
    rows = budget // max(bytes_per_row, 1)
    rows = max(8, (rows // 8) * 8)       # sublane-aligned
    rows = min(rows, max_rows)           # >=512 rows already ~HBM roofline; bound per-step latency
    return int(min(total_rows, rows))


def positional_encoding_forward(x: jnp.ndarray, pe: jnp.ndarray, *,
                                min_bytes_for_kernel: int = 1 << 20,
                                in_place: bool = False) -> jnp.ndarray:
    """x: (S, B, D); pe: (max_len, D). Returns x + pe[:S] broadcast over batch."""
    S, B, D = x.shape
    if S > pe.shape[0]:
        raise ValueError(f"sequence length {S} exceeds positional-encoding max_len {pe.shape[0]}")
    if pe.shape[1] != D:
        raise ValueError(f"d_model mismatch: x has {D}, pe has {pe.shape[1]}")

    # Output keeps x.dtype (note: PyTorch type-promotes half x to f32 here;
    # identical behavior for the f32 case exercised below).
    pe_s = pe[:S].astype(x.dtype)

    # Tiny inputs: fixed pallas_call launch/DMA-setup overhead dwarfs the add;
    # a fused XLA elementwise op is strictly faster.
    if x.size * x.dtype.itemsize < min_bytes_for_kernel:
        return x + pe_s[:, None, :]

    BD = B * D
    itemsize = x.dtype.itemsize

    # Fold sequence rows into lanes when the flat row is narrower than a vreg
    # (B*D < 128) so stores are unmasked full-width vst instead of masked.
    fold = 1
    if BD < 128:
        f = 128 // math.gcd(BD, 128)
        if S % f == 0:
            fold = f

    if fold > 1:
        rows, cols = S // fold, fold * BD
        x2 = x.reshape(rows, cols)        # free: collapses contiguous trailing dims
        pe2 = jnp.broadcast_to(pe_s[:, None, :], (S, B, D)).reshape(rows, cols)
        # 2*(x tile) + 2*(pe tile) + 2*(out tile), double-buffered.
        bytes_per_row = 6 * cols * itemsize
        TS = _pick_tile_rows(rows, bytes_per_row)
        kernel = _pe_add_folded_kernel
        in_specs = [pl.BlockSpec((TS, cols), lambda i: (i, 0)),
                    pl.BlockSpec((TS, cols), lambda i: (i, 0))]
        est_vmem = 6 * TS * cols * itemsize + (1 << 20)
        operands = (x2, pe2)
    else:
        rows, cols = S, BD
        x2 = x.reshape(rows, cols)        # free reshape
        # 2*(x tile) + 2*(out tile) + 1*(replicated-pe temp) + 2*(pe tile).
        bytes_per_row = 5 * cols * itemsize + 2 * D * itemsize
        TS = _pick_tile_rows(rows, bytes_per_row)
        kernel = functools.partial(_pe_add_bcast_kernel, batch=B)
        in_specs = [pl.BlockSpec((TS, cols), lambda i: (i, 0)),
                    pl.BlockSpec((TS, D), lambda i: (i, 0))]
        est_vmem = (5 * cols + 2 * D) * TS * itemsize + (1 << 20)
        operands = (x2, pe_s)

    vmem_limit = int(min(max(32 << 20, est_vmem), 64 << 20))

    out2 = pl.pallas_call(
        kernel,
        out_shape=jax.ShapeDtypeStruct((rows, cols), x.dtype),
        grid=(pl.cdiv(rows, TS),),
        in_specs=in_specs,
        out_specs=pl.BlockSpec((TS, cols), lambda i: (i, 0)),
        compiler_params=pltpu.CompilerParams(
            dimension_semantics=("parallel",),
            vmem_limit_bytes=vmem_limit,
        ),
        input_output_aliases=({0: 0} if in_place else {}),
    )(*operands)
    return out2.reshape(S, B, D)


if __name__ == "__main__":
    key = jax.random.PRNGKey(0)

    # Small shapes implied by the module: (seq, batch, d_model) = (8, 2, 32).
    S, B, D = 8, 2, 32
    pe_small = make_positional_encoding(d_model=D, max_len=64)
    x_small = jax.random.normal(key, (S, B, D), dtype=jnp.float32)

    # Force the Pallas path (the default dispatcher would route this tiny input
    # to XLA).  B*D = 64 < 128 -> folded (lane-dense) path.
    out_small = jax.block_until_ready(
        positional_encoding_forward(x_small, pe_small, min_bytes_for_kernel=0)
    )
    ref_small = x_small + pe_small[:S][:, None, :]
    assert out_small.shape == (S, B, D)
    assert jnp.allclose(out_small, ref_small, atol=1e-6, rtol=1e-6)

    # Larger sequence, still narrow d_model: multi-step double-buffered grid on
    # the folded path (rows=3072, TS=2048 -> grid=2, partial trailing block).
    S2, B2, D2 = 6144, 2, 32
    pe_big = make_positional_encoding(d_model=D2, max_len=8192)
    x_big = jax.random.normal(jax.random.PRNGKey(0), (S2, B2, D2), dtype=jnp.float32)
    out_big = jax.block_until_ready(
        positional_encoding_forward(x_big, pe_big, min_bytes_for_kernel=0)
    )
    ref_big = x_big + pe_big[:S2][:, None, :]
    assert jnp.allclose(out_big, ref_big, atol=1e-6, rtol=1e-6)

    # Wide d_model: B*D >= 128 -> un-folded path with in-kernel batch
    # replication of pe (pe HBM read stays at 1/B of x).
    S3, B3, D3 = 4096, 2, 128
    pe_wide = make_positional_encoding(d_model=D3, max_len=4096)
    x_wide = jax.random.normal(jax.random.PRNGKey(0), (S3, B3, D3), dtype=jnp.float32)
    out_wide = jax.block_until_ready(
        positional_encoding_forward(x_wide, pe_wide, min_bytes_for_kernel=0)
    )
    ref_wide = x_wide + pe_wide[:S3][:, None, :]
    assert jnp.allclose(out_wide, ref_wide, atol=1e-6, rtol=1e-6)

    # Default dispatch: tiny input takes the fused-XLA fallback (same numerics).
    out_fallback = jax.block_until_ready(positional_encoding_forward(x_small, pe_small))
    assert jnp.allclose(out_fallback, ref_small, atol=1e-6, rtol=1e-6)

    print("KERNEL_OK")
</pallas_src>

<mosaic_0001>
module attributes {stable_mosaic.version = 11 : i64} {
  func.func @_pe_add_folded_kernel(%arg0: i32, %arg1: memref<4x128xf32, #tpu.memory_space<vmem>>, %arg2: memref<4x128xf32, #tpu.memory_space<vmem>>, %arg3: memref<4x128xf32, #tpu.memory_space<vmem>>) attributes {dimension_semantics = [#tpu.dimension_semantics<parallel>], iteration_bounds = array<i64: 1>, scalar_prefetch = 0 : i64, scratch_operands = 0 : i64, tpu.core_type = #tpu.core_type<tc>, window_params = [{transform_indices = @transform_0, window_bounds = array<i64: 4, 128>}, {transform_indices = @transform_1, window_bounds = array<i64: 4, 128>}, {transform_indices = @transform_2, window_bounds = array<i64: 4, 128>}]} {
    %c0 = arith.constant 0 : index
    %c0_0 = arith.constant 0 : index
    %0 = vector.load %arg1[%c0, %c0_0] : memref<4x128xf32, #tpu.memory_space<vmem>>, vector<4x128xf32>
    %c0_1 = arith.constant 0 : index
    %c0_2 = arith.constant 0 : index
    %1 = vector.load %arg2[%c0_1, %c0_2] : memref<4x128xf32, #tpu.memory_space<vmem>>, vector<4x128xf32>
    %2 = arith.addf %0, %1 : vector<4x128xf32>
    %c0_3 = arith.constant 0 : index
    %c0_4 = arith.constant 0 : index
    %3 = vector.load %arg3[%c0_3, %c0_4] : memref<4x128xf32, #tpu.memory_space<vmem>>, vector<4x128xf32>
    tpu.vector_store %arg3[%c0_3, %c0_4], %2 {strides = array<i32>} : memref<4x128xf32, #tpu.memory_space<vmem>>, vector<4x128xf32>,
    return
  }
  func.func @transform_0(%arg0: i32) -> (i32, i32) {
    %c0_i32 = arith.constant 0 : i32
    %c0_i32_0 = arith.constant 0 : i32
    return %arg0, %c0_i32 : i32, i32
  }
  func.func @transform_1(%arg0: i32) -> (i32, i32) {
    %c0_i32 = arith.constant 0 : i32
    %c0_i32_0 = arith.constant 0 : i32
    return %arg0, %c0_i32 : i32, i32
  }
  func.func @transform_2(%arg0: i32) -> (i32, i32) {
    %c0_i32 = arith.constant 0 : i32
    %c0_i32_0 = arith.constant 0 : i32
    return %arg0, %c0_i32 : i32, i32
  }
}

</mosaic_0001>

<bundles_post_ra>
// kernel: tpu_custom_call.1
= control target key start
LH: loop header
LB: loop body
LE: loop exit
PB: predicated region body
PF: predicated region fallthrough
CT: control target
= control target key end

     0   :  { %7 = vsyncpa [#allocation3], 0  ;;  %s170_s0 = inlined_call_operand.hbm [shape: f32[4,128], index: 0, kind: input, shape index: {}]   ;;  %s171_s1 = inlined_call_operand.hbm [shape: f32[4,128], index: 1, kind: input, shape index: {}]   ;;  %s172_s2 = inlined_call_operand.hbm [shape: f32[4,128], index: 2, kind: output, shape index: {}]  }
   0x1   :  { %8 = vsyncpa [#allocation6], 0 }
   0x2   :  { %9 = vsyncpa [#allocation4], 0  ;;  %s15_s11 = sshll.u32 %s170_s0, 4  ;;  %s143_s12 = smov [#allocation2]   ;;  %s16_s11 = int_to_ptr.hbm [resolvable:$true] %s15_s11 }
   0x3   :  { %s17_s13 = sshll.u32 %s143_s12, 4  ;;  %s26_s16 = sshll.u32 %s171_s1, 4  ;;  %s18_s13 = int_to_ptr.vmem [resolvable:$true] %s17_s13  ;;  %s27_s16 = int_to_ptr.hbm [resolvable:$true] %s26_s16 }
   0x4   :  { %20 = dma.hbm_to_vmem [thread:$0]  %s16_s11, 64, %s18_s13, [#allocation3]  }
   0x5   :  { %s144_s17 = smov [#allocation5]  }
   0x6   :  { %s28_s18 = sshll.u32 %s144_s17, 4  ;;  %s29_s18 = int_to_ptr.vmem [resolvable:$true] %s28_s18 }
   0x7   :  { %31 = dma.hbm_to_vmem [thread:$0]  %s27_s16, 64, %s29_s18, [#allocation6]  }
   0x8   :  { %137 = dma.done.wait [#allocation3], 64  }
   0x9   :  { %138 = vsyncadd [#allocation3], 4294967232 }
   0xa   :  { %139 = dma.done.wait [#allocation6], 64  }
   0xb   :  { %140 = vsyncadd [#allocation6], 4294967232  ;;  %s145_s19 = smov [#allocation7]   ;;  %s51_s22 = sshll.u32 %s172_s2, 4  ;;  %v40_v0 = vld [vmem:[#allocation2] sm:$0xf]  ;;  %s52_s22 = int_to_ptr.hbm [resolvable:$true] %s51_s22 }
   0xc   :  { %s49_s0 = sshll.u32 %s145_s19, 4  ;;  %v41_v1 = vld [vmem:[#allocation5] sm:$0xf]  ;;  %s50_s0 = int_to_ptr.vmem [resolvable:$true] %s49_s0 }
   0xd   :  { %v42_v2 = vadd.f32 %v41_v1, %v40_v0 }
   0xf   :  { %43 = vst [vmem:[#allocation7] sm:$0xf] %v42_v2 }
  0x10   :  { %54 = dma.vmem_to_hbm [thread:$0]  %s50_s0, 64, %s52_s22, [#allocation4]  }
  0x11   :  { %141 = dma.done.wait [#allocation4], 64  }
  0x12   :  { %142 = vsyncadd [#allocation4], 4294967232 }
  0x13   :  { %59 = vsyncpa [#allocation3], 1 }
  0x14   :  { %60 = vsyncpa [#allocation6], 1 }
  0x15   :  { %61 = vsyncpa [#allocation4], 1 }

</bundles_post_ra>
